<compile_context>
chip_gen: v5e
topology: v5e:2x2
jax: 0.10.0
libtpu: 0.0.40
codegen_flags: <defaults>
</compile_context>

<pallas_src>
import functools

import jax
import jax.numpy as jnp
from jax.experimental import pallas as pl
from jax.experimental.pallas import tpu as pltpu

_SUBLANE = 16  # bf16-safe sublane alignment for batch tiles (also fine for f32)


def policy_head_kernel(x_ref, w1_ref, b1_ref, w2_ref, b2_ref, out_ref):
    # One batch tile (TB, emb_dim) per grid step; weights resident in VMEM.
    x = x_ref[...].astype(jnp.bfloat16)                            # in-kernel cast
    # MXU pass 1: bf16 operands, f32 accumulation; bias + ReLU in f32 on VPU.
    h = jnp.dot(x, w1_ref[...],
                preferred_element_type=jnp.float32) + b1_ref[...]  # (TB, 256) f32
    h = jnp.maximum(h, 0.0)
    # MXU pass 2: cast activations back to bf16 (native MXU path), f32 accum.
    y = jnp.dot(h.astype(jnp.bfloat16), w2_ref[...],
                preferred_element_type=jnp.float32) + b2_ref[...]  # (TB, 128) f32
    out_ref[...] = y.astype(out_ref.dtype)  # bf16 lane-dense store (halves writeback)


def _round_up(v, m):
    return ((v + m - 1) // m) * m


def prepare_policy_head_params(w1, b1, w2, b2):
    """One-time parameter prep (cast + lane padding). Cache the result and reuse
    it across calls so the per-call path only runs the pallas_call."""
    num_actions = w2.shape[1]
    n_pad = _round_up(num_actions, 128)
    if n_pad != num_actions:
        w2 = jnp.pad(w2, ((0, 0), (0, n_pad - num_actions)))
        b2 = jnp.pad(b2, ((0, 0), (0, n_pad - num_actions)))
    return (w1.astype(jnp.bfloat16), b1.astype(jnp.float32),
            w2.astype(jnp.bfloat16), b2.astype(jnp.float32), num_actions)


def _select_tb(batch, desired_tb):
    """Adaptive batch tile: multiple of 16, bounded padding waste, and >=2 grid
    steps whenever possible so v7x's second TensorCore engages."""
    desired_tb = max(_SUBLANE, _round_up(desired_tb, _SUBLANE))
    b_aligned = _round_up(batch, _SUBLANE)
    n_tiles = pl.cdiv(b_aligned, desired_tb)
    if n_tiles == 1 and b_aligned >= 2 * _SUBLANE:
        n_tiles = 2
    tb = _round_up(pl.cdiv(b_aligned, n_tiles), _SUBLANE)
    return min(tb, b_aligned)


@functools.partial(jax.jit, static_argnames=("num_actions", "tb"))
def policy_head_prepared(x, w1_bf, b1_f32, w2_bf, b2_f32, *, num_actions, tb=1024):
    """y = relu(x @ w1 + b1) @ w2 + b2 using pre-prepared (cast/padded) params."""
    B, emb_dim = x.shape
    hidden = w1_bf.shape[1]
    n_pad = w2_bf.shape[1]
    out_dtype = x.dtype

    # Batch tiling (trace-time Python on static shapes).
    TB = _select_tb(B, tb)
    B_pad = _round_up(B, TB)
    if B_pad != B:
        x = jnp.pad(x, ((0, B_pad - B), (0, 0)))  # f32 pad only; no wrapper cast pass

    # VMEM footprint estimate: double-buffered x/out tiles + f32/bf16 hidden
    # scratch + resident weights.  Only force a limit if an aggressive TB
    # would exceed the default scoped VMEM (matters first on v7x, 64 MiB phys).
    vmem_est = (2 * TB * emb_dim * 4          # x tiles (f32, double-buffered)
                + 2 * TB * n_pad * 2          # out tiles (bf16, double-buffered)
                + TB * hidden * (4 + 2)       # h f32 + bf16 copy
                + TB * emb_dim * 2            # in-kernel bf16 x copy
                + (emb_dim * hidden + hidden * n_pad) * 2
                + (hidden + n_pad) * 4)
    cp_kwargs = {"dimension_semantics": ("parallel",)}  # megacore batch split on v7x
    if vmem_est > 24 * 1024 * 1024:
        cp_kwargs["vmem_limit_bytes"] = min(2 * vmem_est, 60 * 1024 * 1024)

    grid = (B_pad // TB,)
    out = pl.pallas_call(
        policy_head_kernel,
        out_shape=jax.ShapeDtypeStruct((B_pad, n_pad), jnp.bfloat16),
        grid_spec=pltpu.PrefetchScalarGridSpec(
            num_scalar_prefetch=0,
            grid=grid,
            in_specs=[
                pl.BlockSpec((TB, emb_dim), lambda i: (i, 0)),      # x: tiled on batch
                pl.BlockSpec((emb_dim, hidden), lambda i: (0, 0)),  # w1: resident
                pl.BlockSpec((1, hidden), lambda i: (0, 0)),        # b1: resident
                pl.BlockSpec((hidden, n_pad), lambda i: (0, 0)),    # w2: resident
                pl.BlockSpec((1, n_pad), lambda i: (0, 0)),         # b2: resident
            ],
            out_specs=pl.BlockSpec((TB, n_pad), lambda i: (i, 0)),
        ),
        compiler_params=pltpu.CompilerParams(**cp_kwargs),
    )(x, w1_bf, b1_f32, w2_bf, b2_f32)

    # Strip batch/lane padding outside the kernel; cast back to caller dtype.
    return out[:B, :num_actions].astype(out_dtype)


def policy_head(x, w1, b1, w2, b2, *, tb=1024):
    """Convenience wrapper: preps params then calls the kernel.  For repeated
    calls, do prepare_policy_head_params() once and call policy_head_prepared."""
    w1_bf, b1_f32, w2_bf, b2_f32, num_actions = prepare_policy_head_params(
        w1, b1, w2, b2)
    return policy_head_prepared(x, w1_bf, b1_f32, w2_bf, b2_f32,
                                num_actions=num_actions, tb=tb)


if __name__ == "__main__":
    emb_dim = 64
    hidden = 256
    num_actions = 81
    batch = 8

    key = jax.random.PRNGKey(0)
    kx, kw1, kb1, kw2, kb2 = jax.random.split(key, 5)

    # Deterministic synthetic parameters (mimic small-uniform Linear init).
    x = jax.random.normal(kx, (batch, emb_dim), dtype=jnp.float32)
    w1 = jax.random.uniform(kw1, (emb_dim, hidden), jnp.float32, -0.1, 0.1)
    b1 = jax.random.uniform(kb1, (1, hidden), jnp.float32, -0.1, 0.1)
    w2 = jax.random.uniform(kw2, (hidden, num_actions), jnp.float32, -0.1, 0.1)
    b2 = jax.random.uniform(kb2, (1, num_actions), jnp.float32, -0.1, 0.1)

    # One-time parameter prep (cached), then the kernel call.
    params = prepare_policy_head_params(w1, b1, w2, b2)
    out = jax.block_until_ready(
        policy_head_prepared(x, *params[:4], num_actions=params[4]))
    assert out.shape == (batch, num_actions)

    # Reference matched to the kernel's bf16-operand / f32-accumulate dots
    # (output additionally rounds to bf16 at the final store -> modest atol).
    ref_h = jnp.maximum(
        jnp.dot(x.astype(jnp.bfloat16), w1.astype(jnp.bfloat16),
                preferred_element_type=jnp.float32) + b1, 0.0)
    ref_bf16 = jnp.dot(ref_h.astype(jnp.bfloat16), w2.astype(jnp.bfloat16),
                       preferred_element_type=jnp.float32) + b2
    assert jnp.allclose(out, ref_bf16, atol=2e-2, rtol=2e-2)

    # Pure-f32 semantic reference (loose tolerance covers bf16 operand rounding
    # plus the bf16 output store).
    ref_f32 = jnp.maximum(x @ w1 + b1, 0.0) @ w2 + b2
    assert jnp.allclose(out, ref_f32, atol=5e-2, rtol=5e-2)

    print("KERNEL_OK")
</pallas_src>

<mosaic_0001>
module attributes {stable_mosaic.version = 11 : i64} {
  func.func @policy_head_kernel(%arg0: i32, %arg1: memref<16x64xf32, #tpu.memory_space<vmem>>, %arg2: memref<64x256xbf16, #tpu.memory_space<vmem>>, %arg3: memref<1x256xf32, #tpu.memory_space<vmem>>, %arg4: memref<256x128xbf16, #tpu.memory_space<vmem>>, %arg5: memref<1x128xf32, #tpu.memory_space<vmem>>, %arg6: memref<16x128xbf16, #tpu.memory_space<vmem>>) attributes {dimension_semantics = [#tpu.dimension_semantics<parallel>], iteration_bounds = array<i64: 1>, scalar_prefetch = 0 : i64, scratch_operands = 0 : i64, tpu.core_type = #tpu.core_type<tc>, window_params = [{transform_indices = @transform_0, window_bounds = array<i64: 16, 64>}, {pipeline_mode = #tpu.pipeline_mode<synchronous>, transform_indices = @transform_1, window_bounds = array<i64: 64, 256>}, {pipeline_mode = #tpu.pipeline_mode<synchronous>, transform_indices = @transform_2, window_bounds = array<i64: 1, 256>}, {pipeline_mode = #tpu.pipeline_mode<synchronous>, transform_indices = @transform_3, window_bounds = array<i64: 256, 128>}, {pipeline_mode = #tpu.pipeline_mode<synchronous>, transform_indices = @transform_4, window_bounds = array<i64: 1, 128>}, {transform_indices = @transform_5, window_bounds = array<i64: 16, 128>}]} {
    %c0 = arith.constant 0 : index
    %c0_0 = arith.constant 0 : index
    %0 = vector.load %arg1[%c0, %c0_0] : memref<16x64xf32, #tpu.memory_space<vmem>>, vector<16x64xf32>
    %1 = arith.truncf %0 : vector<16x64xf32> to vector<16x64xbf16>
    %c0_1 = arith.constant 0 : index
    %c0_2 = arith.constant 0 : index
    %2 = vector.load %arg2[%c0_1, %c0_2] : memref<64x256xbf16, #tpu.memory_space<vmem>>, vector<64x256xbf16>
    %cst = arith.constant dense<0.000000e+00> : vector<16x256xf32>
    %3 = tpu.matmul %1, %2, %cst {dimension_numbers = #tpu.dot_dimension_numbers<[1], [0], [0], [1], [0, 0, 1, 1], [], []>} : vector<16x64xbf16>, vector<64x256xbf16>, vector<16x256xf32> -> vector<16x256xf32>
    %c0_3 = arith.constant 0 : index
    %c0_4 = arith.constant 0 : index
    %4 = vector.load %arg3[%c0_3, %c0_4] : memref<1x256xf32, #tpu.memory_space<vmem>>, vector<1x256xf32>
    %5 = vector.broadcast %4 : vector<1x256xf32> to vector<16x256xf32>
    %6 = arith.addf %3, %5 : vector<16x256xf32>
    %cst_5 = arith.constant 0.000000e+00 : f32
    %7 = vector.broadcast %cst_5 : f32 to vector<16x256xf32>
    %8 = arith.maximumf %6, %7 : vector<16x256xf32>
    %9 = arith.truncf %8 : vector<16x256xf32> to vector<16x256xbf16>
    %c0_6 = arith.constant 0 : index
    %c0_7 = arith.constant 0 : index
    %10 = vector.load %arg4[%c0_6, %c0_7] : memref<256x128xbf16, #tpu.memory_space<vmem>>, vector<256x128xbf16>
    %cst_8 = arith.constant dense<0.000000e+00> : vector<16x128xf32>
    %11 = tpu.matmul %9, %10, %cst_8 {dimension_numbers = #tpu.dot_dimension_numbers<[1], [0], [0], [1], [0, 0, 1, 1], [], []>} : vector<16x256xbf16>, vector<256x128xbf16>, vector<16x128xf32> -> vector<16x128xf32>
    %c0_9 = arith.constant 0 : index
    %c0_10 = arith.constant 0 : index
    %12 = vector.load %arg5[%c0_9, %c0_10] : memref<1x128xf32, #tpu.memory_space<vmem>>, vector<1x128xf32>
    %13 = vector.broadcast %12 : vector<1x128xf32> to vector<16x128xf32>
    %14 = arith.addf %11, %13 : vector<16x128xf32>
    %15 = arith.truncf %14 : vector<16x128xf32> to vector<16x128xbf16>
    %c0_11 = arith.constant 0 : index
    %c0_12 = arith.constant 0 : index
    %16 = vector.load %arg6[%c0_11, %c0_12] : memref<16x128xbf16, #tpu.memory_space<vmem>>, vector<16x128xbf16>
    tpu.vector_store %arg6[%c0_11, %c0_12], %15 {strides = array<i32>} : memref<16x128xbf16, #tpu.memory_space<vmem>>, vector<16x128xbf16>,
    return
  }
  func.func @transform_0(%arg0: i32) -> (i32, i32) {
    %c0_i32 = arith.constant 0 : i32
    %c0_i32_0 = arith.constant 0 : i32
    return %arg0, %c0_i32 : i32, i32
  }
  func.func @transform_1(%arg0: i32) -> (i32, i32) {
    %c0_i32 = arith.constant 0 : i32
    %c0_i32_0 = arith.constant 0 : i32
    %c0_i32_1 = arith.constant 0 : i32
    return %c0_i32, %c0_i32_0 : i32, i32
  }
  func.func @transform_2(%arg0: i32) -> (i32, i32) {
    %c0_i32 = arith.constant 0 : i32
    %c0_i32_0 = arith.constant 0 : i32
    %c0_i32_1 = arith.constant 0 : i32
    return %c0_i32, %c0_i32_0 : i32, i32
  }
  func.func @transform_3(%arg0: i32) -> (i32, i32) {
    %c0_i32 = arith.constant 0 : i32
    %c0_i32_0 = arith.constant 0 : i32
    %c0_i32_1 = arith.constant 0 : i32
    return %c0_i32, %c0_i32_0 : i32, i32
  }
  func.func @transform_4(%arg0: i32) -> (i32, i32) {
    %c0_i32 = arith.constant 0 : i32
    %c0_i32_0 = arith.constant 0 : i32
    %c0_i32_1 = arith.constant 0 : i32
    return %c0_i32, %c0_i32_0 : i32, i32
  }
  func.func @transform_5(%arg0: i32) -> (i32, i32) {
    %c0_i32 = arith.constant 0 : i32
    %c0_i32_0 = arith.constant 0 : i32
    return %arg0, %c0_i32 : i32, i32
  }
}

</mosaic_0001>

<bundles_post_ra>
// kernel: policy_head_prepared.1
= control target key start
LH: loop header
LB: loop body
LE: loop exit
PB: predicated region body
PF: predicated region fallthrough
CT: control target
= control target key end

     0   :  { %10 = vsyncpa [#allocation3], 0  ;;  %s561_s0 = inlined_call_operand.vmem [shape: f32[16,64], index: 0, kind: input, shape index: {}]   ;;  %s562_s1 = inlined_call_operand.hbm [shape: bf16[64,256], index: 1, kind: input, shape index: {}]   ;;  %s563_s2 = inlined_call_operand.vmem [shape: f32[1,256], index: 2, kind: input, shape index: {}]   ;;  %s564_s3 = inlined_call_operand.hbm [shape: bf16[256,128], index: 3, kind: input, shape index: {}]   ;;  %s565_s4 = inlined_call_operand.vmem [shape: f32[1,128], index: 4, kind: input, shape index: {}]   ;;  %s566_s5 = inlined_call_operand.vmem [shape: bf16[16,128], index: 5, kind: output, shape index: {}]  }
   0x1   :  { %s18_s20 = sshll.u32 %s562_s1, 4  ;;  %s19_s20 = int_to_ptr.hbm [resolvable:$true] %s18_s20 }
   0x2   :  { %11 = vsyncpa [#allocation5], 0  ;;  %s504_s21 = smov [#allocation2]   ;;  %s33_s25 = sshll.u32 %s564_s3, 4  ;;  %s34_s25 = int_to_ptr.hbm [resolvable:$true] %s33_s25 }
   0x3   :  { %s20_s22 = sshll.u32 %s504_s21, 4  ;;  %s505_s26 = smov 128   ;;  %s21_s22 = int_to_ptr.vmem [resolvable:$true] %s20_s22 }
   0x4   :  { %s506_s27 = smov 8   ;;  %s507_s28 = smov [#allocation4]  }
   0x5   :  { %26 = dma.hbm_to_vmem [thread:$0]  %s19_s20, 1024, %s21_s22, [#allocation3], %s505_s26, %s505_s26, %s506_s27  }
   0x6   :  { %s35_s29 = sshll.u32 %s507_s28, 4  ;;  %s508_s30 = smov 64   ;;  %s36_s29 = int_to_ptr.vmem [resolvable:$true] %s35_s29 }
   0x7   :  { %s509_s6 = smov 4  }
   0x8   :  { %41 = dma.hbm_to_vmem [thread:$0]  %s34_s25, 2048, %s36_s29, [#allocation5], %s508_s30, %s508_s30, %s509_s6  }
   0x9   :  { %500 = dma.done.wait [#allocation3], 1024  }
   0xa   :  { %501 = vsyncadd [#allocation3], 4294966272 }
   0xb   :  { %502 = dma.done.wait [#allocation5], 2048  }
   0xc   :  { %503 = vsyncadd [#allocation5], 4294965248  ;;  %v344_v0 = vld [vmem:[#allocation2 + $0x30] sm:$0xf]  ;;  %v423_v1 = vld [vmem:[#allocation2 + $0x34] sm:$0xf0] }
   0xd   :  { %v422_v2 = vld [vmem:[#allocation2 + $0x34] sm:$0xf]  ;;  %v345_v3 = vor.u32 %v423_v1, %v344_v0  ;;  %v346_v4 = vld [vmem:[#allocation2 + $0x38] sm:$0xf0]  ;;  %v336_v5 = vld [vmem:[#allocation2 + $0x20] sm:$0xf] }
   0xe   :  { %v421_v6 = vld [vmem:[#allocation2 + $0x24] sm:$0xf0]  ;;  %v349_v7 = vor.u32 %v422_v2, %v346_v4  ;;  %v420_v8 = vld [vmem:[#allocation2 + $0x24] sm:$0xf]  ;;  %v338_v9 = vld [vmem:[#allocation2 + $0x28] sm:$0xf0] }
   0xf   :  { %118 = vmatpush.bf16.msra.mxu0 %v345_v3  ;;  %v337_v10 = vor.u32 %v421_v6, %v336_v5  ;;  %v341_v11 = vor.u32 %v420_v8, %v338_v9  ;;  %v328_v12 = vld [vmem:[#allocation2 + $0x10] sm:$0xf]  ;;  %v419_v13 = vld [vmem:[#allocation2 + $0x14] sm:$0xf0]  ;;  %v418_v14 = vld [vmem:[#allocation2 + $0x14] sm:$0xf] }
  0x10   :  { %132 = vmatpush.bf16.msra.mxu1 %v349_v7  ;;  %v330_v15 = vld [vmem:[#allocation2 + $0x18] sm:$0xf0]  ;;  %v329_v18 = vor.u32 %v419_v13, %v328_v12  ;;  %v320_v19 = vld [vmem:[#allocation2] sm:$0xf]  ;;  %v417_v21 = vld [vmem:[#allocation2 + $0x4] sm:$0xf0] }
  0x11   :  { %v431_v16 = vld [vmem:[#allocation4 + $0x38] sm:$0xff]  ;;  %v333_v20 = vor.u32 %v418_v14, %v330_v15  ;;  %v416_v22 = vld [vmem:[#allocation2 + $0x4] sm:$0xf]  ;;  %v430_v23 = vld [vmem:[#allocation4 + $0x30] sm:$0xff]  ;;  %v321_v26 = vor.u32 %v417_v21, %v320_v19  ;;  %vm110_vm0 = vcmask 523264  }
  0x12   :  { %v439_v17 = vld [vmem:[#allocation4 + $0x78] sm:$0xff]  ;;  %280 = vmatpush.bf16.msra.mxu2 %v431_v16  ;;  %v322_v24 = vld [vmem:[#allocation2 + $0x8] sm:$0xf0]  ;;  %v438_v25 = vld [vmem:[#allocation4 + $0x70] sm:$0xff] }
  0x13   :  { %119 = vmatpush.bf16.msra.mxu0 %v337_v10  ;;  %294 = vmatpush.bf16.msra.mxu3 %v439_v17  ;;  %v53_v27 = vld [vmem:[%s561_s0] sm:$0xff]  ;;  %v54_v28 = vld [vmem:[%s561_s0 + $0x8] sm:$0xff]  ;;  %v325_v29 = vor.u32 %v416_v22, %v322_v24  ;;  %v427_v35 = vld [vmem:[#allocation4 + $0x18] sm:$0xff] }
  0x14   :  { %133 = vmatpush.bf16.msra.mxu1 %v341_v11  ;;  %v429_v30 = vld [vmem:[#allocation4 + $0x28] sm:$0xff]  ;;  %v55_v32 = vpack.c.bf16 %v54_v28, %v53_v27  ;;  %v428_v33 = vld [vmem:[#allocation4 + $0x20] sm:$0xff]  ;;  %v435_v36 = vld [vmem:[#allocation4 + $0x58] sm:$0xff] }
  0x15   :  { %v437_v31 = vld [vmem:[#allocation4 + $0x68] sm:$0xff]  ;;  %v436_v34 = vld [vmem:[#allocation4 + $0x60] sm:$0xff]  ;;  %v426_v37 = vld [vmem:[#allocation4 + $0x10] sm:$0xff] }
  0x16   :  { %281 = vmatpush.bf16.msra.mxu2 %v430_v23  ;;  %v434_v38 = vld [vmem:[#allocation4 + $0x50] sm:$0xff]  ;;  %v425_v39 = vld [vmem:[#allocation4 + $0x8] sm:$0xff]  ;;  %v424_v41 = vld [vmem:[#allocation4] sm:$0xff] }
  0x17   :  { %120 = vmatpush.bf16.msra.mxu0 %v329_v18  ;;  %295 = vmatpush.bf16.msra.mxu3 %v438_v25  ;;  %v433_v40 = vld [vmem:[#allocation4 + $0x48] sm:$0xff]  ;;  %v432_v42 = vld [vmem:[#allocation4 + $0x40] sm:$0xff] }
  0x18   :  { %134 = vmatpush.bf16.msra.mxu1 %v333_v20  ;;  %v64_v43 = vld [vmem:[%s563_s2] sm:$0x3] }
  0x19   :  { %v66_v46 = vperm.slane %v64_v43, 0  ;;  %v67_v47 = vperm.slane %v64_v43, 1  ;;  %v451_v62 = vld [vmem:[%s565_s4] ss:$0 sm:$0xff] }
  0x1a   :  { %282 = vmatpush.bf16.msra.mxu2 %v429_v30 }
  0x1b   :  { %121 = vmatpush.bf16.msra.mxu0 %v321_v26  ;;  %296 = vmatpush.bf16.msra.mxu3 %v437_v31 }
  0x1c   :  { %135 = vmatpush.bf16.msra.mxu1 %v325_v29 }
  0x1e   :  { %350 = vmatmul.msk.bf16.vlgmr.msra.gmra.mxu0 %vm110_vm0, %v55_v32  ;;  %283 = vmatpush.bf16.msra.mxu2 %v428_v33 }
  0x1f   :  { %351 = vmatmul.msk.bf16.vlgmr.msra.gmra.mxu1 %vm110_vm0, %v55_v32  ;;  %297 = vmatpush.bf16.msra.mxu3 %v436_v34 }
  0x22   :  { %284 = vmatpush.bf16.msra.mxu2 %v427_v35 }
  0x23   :  { %298 = vmatpush.bf16.msra.mxu3 %v435_v36 }
  0x26   :  { %285 = vmatpush.bf16.msra.mxu2 %v426_v37 }
  0x27   :  { %299 = vmatpush.bf16.msra.mxu3 %v434_v38 }
  0x2a   :  { %286 = vmatpush.bf16.msra.mxu2 %v425_v39 }
  0x2b   :  { %300 = vmatpush.bf16.msra.mxu3 %v433_v40 }
  0x2e   :  { %287 = vmatpush.bf16.msra.mxu2 %v424_v41 }
  0x2f   :  { %301 = vmatpush.bf16.msra.mxu3 %v432_v42 }
  0x9b   :  { %v123_v44 = vpop.f32.mrf.mxu0 }
  0x9c   :  { %v137_v45 = vpop.f32.mrf.mxu1  ;;  %v124_v48 = vadd.f32 %v123_v44, %v66_v46 }
  0x9d   :  { %v138_v49 = vadd.f32 %v137_v45, %v67_v47 }
  0x9e   :  { %v142_v54 = vmax.f32 %v124_v48, 0.0 }
  0x9f   :  { %v143_v56 = vmax.f32 %v138_v49, 0.0 }
  0xa3   :  { %v125_v50 = vpop.f32.mrf.mxu0 }
  0xa4   :  { %v126_v51 = vadd.f32 %v125_v50, %v66_v46  ;;  %v139_v52 = vpop.f32.mrf.mxu1 }
  0xa5   :  { %v140_v53 = vadd.f32 %v139_v52, %v67_v47 }
  0xa6   :  { %v144_v55 = vmax.f32 %v126_v51, 0.0 }
  0xa7   :  { %v145_v57 = vmax.f32 %v140_v53, 0.0 }
  0xa8   :  { %v146_v58 = vpack.c.bf16 %v144_v55, %v142_v54 }
  0xa9   :  { %v147_v59 = vpack.c.bf16 %v145_v57, %v143_v56 }
  0xaa   :  { %288 = vmatmul.bf16.vlgmr.msra.gmra.mxu2 %v146_v58 }
  0xab   :  { %302 = vmatmul.bf16.vlgmr.msra.gmra.mxu3 %v147_v59 }
 0x12d   :  { %v289_v60 = vpop.f32.mrf.mxu2 }
 0x12e   :  { %v303_v61 = vpop.f32.mrf.mxu3  ;;  %v290_v63 = vadd.f32 %v451_v62, %v289_v60 }
 0x130   :  { %v304_v3 = vadd.f32 %v303_v61, %v290_v63 }
 0x135   :  { %v291_v0 = vpop.f32.mrf.mxu2 }
 0x136   :  { %v292_v1 = vadd.f32 %v451_v62, %v291_v0  ;;  %v305_v2 = vpop.f32.mrf.mxu3 }
 0x138   :  { %v306_v4 = vadd.f32 %v305_v2, %v292_v1 }
 0x13a   :  { %v443_v5 = vpack.c.bf16 %v306_v4, %v304_v3 }
 0x13c   :  { %444 = vst [vmem:[%s566_s5] sm:$0xff] %v443_v5  }
 0x13d   :  { %316 = vsyncpa [#allocation3], 1 }
 0x13e   :  { %317 = vsyncpa [#allocation5], 1 }

</bundles_post_ra>
